<compile_context>
chip_gen: v7x
topology: tpu7x:2x2x1
jax: 0.10.0
libtpu: 0.0.40
codegen_flags: <defaults>
</compile_context>

<pallas_src>
import functools

import jax
import jax.numpy as jnp
from jax import lax
from jax.experimental import pallas as pl
from jax.experimental.pallas import tpu as pltpu


def _round_up(x, m):
    return (x + m - 1) // m * m


# ---------------------------------------------------------------------------
# Small-shape path: whole problem in VMEM, single kernel invocation, no grid.
# ---------------------------------------------------------------------------
def _linear_small_kernel(x_ref, w_ref, b_ref, o_ref):
    # x_ref: (B, F), w_ref: (H, F), b_ref: (1, H), o_ref: (B, H)
    o_ref[...] = lax.dot_general(
        x_ref[...],
        w_ref[...],
        dimension_numbers=(((1,), (1,)), ((), ())),   # contract over F
        preferred_element_type=jnp.float32,
    ) + b_ref[...]


# ---------------------------------------------------------------------------
# Tiled path: grid (j over H tiles, i over B tiles, k over F tiles), k last.
# Accumulates directly into the f32 output block (resident across k).
# ---------------------------------------------------------------------------
def _linear_tiled_kernel(x_ref, w_ref, b_ref, o_ref):
    k = pl.program_id(2)

    @pl.when(k == 0)
    def _():
        o_ref[...] = jnp.zeros_like(o_ref)

    o_ref[...] += lax.dot_general(
        x_ref[...],
        w_ref[...],
        dimension_numbers=(((1,), (1,)), ((), ())),   # contract over F
        preferred_element_type=jnp.float32,
    )

    @pl.when(k == pl.num_programs(2) - 1)
    def _():
        o_ref[...] += b_ref[...]            # bias added exactly once per tile


_SMALL_VMEM_BUDGET = 4 * 1024 * 1024  # bytes; well under every chip's scoped VMEM


def feedforward_forward(x, weight, bias, *, compute_dtype=None):
    """y = x @ weight.T + bias.

    x: (B, F), weight: (H, F), bias: (H,).  Output is float32 (B, H).
    compute_dtype: optional dtype (e.g. jnp.bfloat16) for the MXU operands;
    accumulation is always float32.
    """
    B, F = x.shape
    H, F2 = weight.shape
    assert F == F2 and bias.shape == (H,)

    bias2 = bias.reshape(1, H).astype(jnp.float32)

    itemsize_in = jnp.dtype(x.dtype).itemsize
    total_bytes = (B * F + H * F) * itemsize_in + (B * H + H) * 4

    # ---------------- small path: no tiling, no padding, no slicing ---------
    if total_bytes <= _SMALL_VMEM_BUDGET:
        return pl.pallas_call(
            _linear_small_kernel,
            out_shape=jax.ShapeDtypeStruct((B, H), jnp.float32),
            in_specs=[
                pl.BlockSpec(memory_space=pltpu.MemorySpace.VMEM),
                pl.BlockSpec(memory_space=pltpu.MemorySpace.VMEM),
                pl.BlockSpec(memory_space=pltpu.MemorySpace.VMEM),
            ],
            out_specs=pl.BlockSpec(memory_space=pltpu.MemorySpace.VMEM),
        )(x, weight, bias2)

    # ---------------- tiled path (large shapes) -----------------------------
    cdt = jnp.dtype(compute_dtype) if compute_dtype is not None else jnp.dtype(x.dtype)
    x_c = x.astype(cdt)
    w_c = weight.astype(cdt)
    itemsize_c = cdt.itemsize
    sub = 16 if itemsize_c == 2 else 8        # bf16 packs 2 rows per sublane

    tm = min(512, _round_up(B, sub))
    tn = min(512, _round_up(H, 128))
    tk = min(1024, _round_up(F, 128))

    # v7x has 2 TensorCores: if the batch axis collapses to one tile, split H
    # into >= 2 j-tiles so the "parallel" grid can be sharded across cores.
    if _round_up(B, sub) <= tm and _round_up(H, 128) <= tn and tn % 256 == 0:
        tn //= 2

    B_pad = _round_up(B, tm)
    H_pad = _round_up(H, tn)
    F_pad = _round_up(F, tk)

    # Fallback padding for non-tile-aligned shapes.  In production, pad the
    # weight/bias once at init so this never runs on the hot path.
    if (B_pad, F_pad) != (B, F):
        x_c = jnp.pad(x_c, ((0, B_pad - B), (0, F_pad - F)))
    if (H_pad, F_pad) != (H, F):
        w_c = jnp.pad(w_c, ((0, H_pad - H), (0, F_pad - F)))
    if H_pad != H:
        bias2 = jnp.pad(bias2, ((0, 0), (0, H_pad - H)))

    grid_j = H_pad // tn
    grid_i = B_pad // tm
    grid_k = F_pad // tk
    grid = (grid_j, grid_i, grid_k)           # j outer (weight reused), k inner

    # Explicit VMEM budget: double-buffered inputs + resident f32 output block.
    vmem_bytes = 2 * (tm * tk * itemsize_c + tn * tk * itemsize_c
                      + tn * 4 + tm * tn * 4)
    vmem_limit = int(min(max(vmem_bytes + (4 << 20), 16 << 20), 48 << 20))

    # Advisory cost estimate: account for operand re-streaming across the grid.
    cost = pl.CostEstimate(
        flops=2 * B_pad * H_pad * F_pad,
        transcendentals=0,
        bytes_accessed=(grid_j * B_pad * F_pad * itemsize_c
                        + grid_i * H_pad * F_pad * itemsize_c
                        + H_pad * 4 + B_pad * H_pad * 4),
    )

    out_p = pl.pallas_call(
        _linear_tiled_kernel,
        out_shape=jax.ShapeDtypeStruct((B_pad, H_pad), jnp.float32),
        grid_spec=pltpu.PrefetchScalarGridSpec(
            num_scalar_prefetch=0,
            grid=grid,
            in_specs=[
                pl.BlockSpec((tm, tk), lambda j, i, k: (i, k)),   # x tile
                pl.BlockSpec((tn, tk), lambda j, i, k: (j, k)),   # W tile (H, F)
                pl.BlockSpec((1, tn), lambda j, i, k: (0, j)),    # bias tile
            ],
            out_specs=pl.BlockSpec((tm, tn), lambda j, i, k: (i, j)),
        ),
        compiler_params=pltpu.CompilerParams(
            dimension_semantics=("parallel", "parallel", "arbitrary"),
            vmem_limit_bytes=vmem_limit,
        ),
        cost_estimate=cost,
    )(x_c, w_c, bias2)

    if (B_pad, H_pad) != (B, H):
        out_p = out_p[:B, :H]
    return out_p


if __name__ == "__main__":
    # Small shapes implied by the module: n_features=16, hidden_size=32, batch=2.
    # (n_classes / layers / activation_type / dropout are unused by forward.)
    B, n_features, hidden_size = 2, 16, 32

    key = jax.random.PRNGKey(0)
    kx, kw, kb = jax.random.split(key, 3)

    x = jax.random.normal(kx, (B, n_features), dtype=jnp.float32)
    bound = 1.0 / jnp.sqrt(n_features)
    weight = jax.random.uniform(kw, (hidden_size, n_features),
                                minval=-bound, maxval=bound, dtype=jnp.float32)
    bias = jax.random.uniform(kb, (hidden_size,),
                              minval=-bound, maxval=bound, dtype=jnp.float32)

    y = jax.block_until_ready(feedforward_forward(x, weight, bias))
    y_ref = x @ weight.T + bias
    assert y.shape == (B, hidden_size)
    assert jnp.allclose(y, y_ref, atol=1e-5, rtol=1e-5)

    # Also exercise the tiled large-shape path with bf16 MXU feeding
    # (f32 accumulation).  Reference uses the same bf16 input rounding so the
    # only difference is f32 accumulation order.
    B2, F2, H2 = 256, 2048, 1024
    k2x, k2w, k2b = jax.random.split(jax.random.PRNGKey(1), 3)
    x2 = jax.random.normal(k2x, (B2, F2), dtype=jnp.float32)
    w2 = jax.random.normal(k2w, (H2, F2), dtype=jnp.float32) / jnp.sqrt(F2)
    b2 = jax.random.normal(k2b, (H2,), dtype=jnp.float32)

    y2 = jax.block_until_ready(
        feedforward_forward(x2, w2, b2, compute_dtype=jnp.bfloat16))
    y2_ref = (x2.astype(jnp.bfloat16).astype(jnp.float32)
              @ w2.astype(jnp.bfloat16).astype(jnp.float32).T + b2)
    assert y2.shape == (B2, H2)
    assert jnp.allclose(y2, y2_ref, atol=1e-2, rtol=1e-2)

    print("KERNEL_OK")
</pallas_src>

<mosaic_0001>
module attributes {stable_mosaic.version = 11 : i64} {
  func.func @_linear_small_kernel(%arg0: memref<2x16xf32, #tpu.memory_space<vmem>>, %arg1: memref<32x16xf32, #tpu.memory_space<vmem>>, %arg2: memref<1x32xf32, #tpu.memory_space<vmem>>, %arg3: memref<2x32xf32, #tpu.memory_space<vmem>>) attributes {dimension_semantics = [], scalar_prefetch = 0 : i64, scratch_operands = 0 : i64, tpu.core_type = #tpu.core_type<tc>} {
    %c0 = arith.constant 0 : index
    %c0_0 = arith.constant 0 : index
    %0 = vector.load %arg0[%c0, %c0_0] : memref<2x16xf32, #tpu.memory_space<vmem>>, vector<2x16xf32>
    %c0_1 = arith.constant 0 : index
    %c0_2 = arith.constant 0 : index
    %1 = vector.load %arg1[%c0_1, %c0_2] : memref<32x16xf32, #tpu.memory_space<vmem>>, vector<32x16xf32>
    %cst = arith.constant dense<0.000000e+00> : vector<2x32xf32>
    %2 = tpu.matmul %0, %1, %cst {dimension_numbers = #tpu.dot_dimension_numbers<[1], [1], [0], [0], [0, 0, 1, 0], [], []>} : vector<2x16xf32>, vector<32x16xf32>, vector<2x32xf32> -> vector<2x32xf32>
    %c0_3 = arith.constant 0 : index
    %c0_4 = arith.constant 0 : index
    %3 = vector.load %arg2[%c0_3, %c0_4] : memref<1x32xf32, #tpu.memory_space<vmem>>, vector<1x32xf32>
    %4 = vector.broadcast %3 : vector<1x32xf32> to vector<2x32xf32>
    %5 = arith.addf %2, %4 : vector<2x32xf32>
    %c0_5 = arith.constant 0 : index
    %c0_6 = arith.constant 0 : index
    %6 = vector.load %arg3[%c0_5, %c0_6] : memref<2x32xf32, #tpu.memory_space<vmem>>, vector<2x32xf32>
    tpu.vector_store %arg3[%c0_5, %c0_6], %5 {strides = array<i32>} : memref<2x32xf32, #tpu.memory_space<vmem>>, vector<2x32xf32>,
    return
  }
}

</mosaic_0001>

<bundles_post_ra>
// kernel: tpu_custom_call.1
= control target key start
LH: loop header
LB: loop body
LE: loop exit
PB: predicated region body
PF: predicated region fallthrough
CT: control target
= control target key end

     0   :  { %vm27_vm0 = vcmask 130048   ;;  %v187_v2 = vmov 0.0|0.0   ;;  %vm188_vm2 = vmmov 0   ;;  %v189_v4 = vmov 0.0   ;;  %s244_s0 = inlined_call_operand.vmem [shape: f32[2,16], index: 0, kind: input, shape index: {}]   ;;  %s245_s1 = inlined_call_operand.vmem [shape: f32[32,16], index: 1, kind: input, shape index: {}]   ;;  %s246_s2 = inlined_call_operand.vmem [shape: f32[1,32], index: 2, kind: input, shape index: {}]   ;;  %s247_s3 = inlined_call_operand.hbm [shape: f32[2,32], index: 3, kind: output, shape index: {}]  }
   0x1   :  { %v16_v0 = vld [vmem:[%s245_s1] sm:$0xff]  ;;  %v17_v1 = vld [vmem:[%s245_s1 + $0x8] sm:$0xff]  ;;  %151 = vmatprep.subr.bf16.mxu0 %v187_v2  ;;  %vm153_vm1 = vmpackc.low %vm27_vm0, %vm27_vm0  ;;  %148 = vmatprep.mubr.msk.f32.mxu0 %vm188_vm2, %v189_v4 }
   0x2   :  { %v152_v3 = vpack.c.bf16 %v17_v1, %v16_v0 }
   0x3   :  { %8 = vsyncpa [#allocation3], 0  ;;  %v18_v5 = vld [vmem:[%s245_s1 + $0x10] sm:$0xff]  ;;  %v19_v6 = vld [vmem:[%s245_s1 + $0x18] sm:$0xff]  ;;  %s190_s24 = smov [#allocation2]   ;;  %vm113_vm3 = vcmask 254976  }
   0x4   :  { %154 = vmatpush3.bf16.xpose.msk.msra.mxu0 %vm153_vm1, %v152_v3  ;;  %v156_v7 = vpack.c.bf16 %v19_v6, %v18_v5  ;;  %v15_v8 = vld [vmem:[%s244_s0] sm:$0x3]  ;;  %s121_s25 = sshll.u32 %s190_s24, 4  ;;  %s122_s25 = int_to_ptr.vmem [resolvable:$true] %s121_s25 }
   0x5   :  { %155 = vmatprep.subr.bf16.mxu0 %v187_v2  ;;  %v129_v9 = vld [vmem:[%s246_s2] ss:$0 sm:$0xff]  ;;  %s163_s1 = scalar_lea.vmem %s122_s25, 32  ;;  %p168_p1 = scmp.lt.s32.totalorder %s122_s25, %s122_s25 }
   0x6   :  { %p164_p0 = scmp.ne.s32.totalorder %s122_s25, %s163_s1  ;;  %p169_p2 = scmp.lt.s32.totalorder %s163_s1, %s163_s1 }
   0x8   :  { %p170_p3 = por %p169_p2, %p168_p1 }
   0xa   :  { %p171_p4 = pnand %p170_p3, %p164_p0 }
   0xc   :  { %158 = vmatpush3.bf16.xpose.msk.msra.mxu0 %vm153_vm1, %v156_v7 }
  0x13   :  { %149 = vmatmul.mubr.msk.f32.vlgmr.msra.gmra.mrb[0].mxu0 %vm27_vm0, %v15_v8 }
  0xe6   :  { %v109_v10 = vpop.f32.mrb[0].mxu0 }
  0xe7   :  { %v110_v11 = vadd.f32 %v129_v9, %v109_v10  ;;  %v150_v12 = vpop.f32.mrb[1].mxu0 }
  0xe9   :  { %114 = vst.msk [vmem:[#allocation2] sm:$0x3] %vm113_vm3, %v110_v11 }
  0xea   :  { %174 = shalt.err (!%p171_p4)
}
  0xeb   :  { %s175_s27 = scalar_lea.hbm %s247_s3, 32 }
  0xec   :  { %p176_p5 = scmp.ne.s32.totalorder %s247_s3, %s175_s27  ;;  %p179_p6 = scmp.lt.u32.totalorder %s175_s27, %s247_s3 }
  0xee   :  { %p181_p7 = pnand %p179_p6, %p176_p5 }
  0xf0   :  { %184 = shalt.err (!%p181_p7)
}
  0xf1   :  { %124 = dma.vmem_to_hbm [thread:$0]  %s122_s25, 32, %s247_s3, [#allocation3]  }
  0xf2   :  { %185 = dma.done.wait [#allocation3], 32  }
  0xf3   :  { %186 = vsyncadd [#allocation3], 4294967264 }
  0xf4   :  { %128 = vsyncpa [#allocation3], 1 }

</bundles_post_ra>
